<compile_context>
chip_gen: v6e
topology: v6e:2x2x1
jax: 0.10.0
libtpu: 0.0.40
codegen_flags: <defaults>
</compile_context>

<pallas_src>
import functools
import math

import jax
import jax.numpy as jnp
from jax.experimental import pallas as pl
from jax.experimental.pallas import tpu as pltpu


def _round_up(x, m):
    return ((x + m - 1) // m) * m


# --------------------------- in-kernel helpers ------------------------------ #

def _project_q(x_ref, wq_ref, bq_ref, scale):
    q = jnp.dot(x_ref[...].astype(jnp.float32),
                wq_ref[...].astype(jnp.float32),
                preferred_element_type=jnp.float32)
    # fold the softmax scale into Q once (tq*Dp muls instead of tq*tk*Dp)
    return (q + bq_ref[...].astype(jnp.float32)) * scale


def _project_kv(c_ref, wkv_ref, bkv_ref, dp):
    # K|V projection in a single MXU pass (Wk|Wv concatenated along columns).
    kv = jnp.dot(c_ref[...].astype(jnp.float32),
                 wkv_ref[...].astype(jnp.float32),
                 preferred_element_type=jnp.float32)
    kv = kv + bkv_ref[...].astype(jnp.float32)
    return kv[:, :dp], kv[:, dp:]


def _mask_scores(s, ki, tile_k, dp, mc_valid):
    key_idx = ki * tile_k + jax.lax.broadcasted_iota(jnp.int32, (tile_k, dp), 0)
    return jnp.where((key_idx < mc_valid)[None, :, :], s, jnp.float32(-1e30))


# ---------------------- fast path: single key chunk ------------------------- #

def _single_chunk_kernel(x_ref, c_ref, wq_ref, bq_ref, wkv_ref, bkv_ref, o_ref,
                         *, scale, dp, tile_k, mc_valid):
    """Grid = (query tiles,). All keys fit in one chunk -> direct softmax."""
    q = _project_q(x_ref, wq_ref, bq_ref, scale)        # (tile_q, Dp)
    k, v = _project_kv(c_ref, wkv_ref, bkv_ref, dp)     # (tile_k, Dp) each

    s = q[:, None, :] * k[None, :, :]                   # (tile_q, tile_k, Dp)
    if mc_valid != tile_k:                               # static: only if padded
        s = _mask_scores(s, 0, tile_k, dp, mc_valid)

    m = jnp.max(s, axis=1)                               # (tile_q, Dp)
    e = jnp.exp(s - m[:, None, :])
    l = jnp.sum(e, axis=1)
    acc = jnp.sum(e * v[None, :, :], axis=1)
    inv = pl.reciprocal(l, approx=False)                 # exact: keeps 1e-5 tol
    o_ref[...] = (acc * inv).astype(o_ref.dtype)


# ---------------- general path: online softmax over key chunks -------------- #

def _multi_chunk_kernel(x_ref, c_ref, wq_ref, bq_ref, wkv_ref, bkv_ref, o_ref,
                        q_scr, m_scr, l_scr, acc_scr,
                        *, scale, dp, tile_k, mc_valid, mc_pad):
    """Grid = (query tiles, key chunks); key-chunk axis is the reduction axis."""
    ki = pl.program_id(1)

    @pl.when(ki == 0)
    def _init():
        q_scr[...] = _project_q(x_ref, wq_ref, bq_ref, scale)
        m_scr[...] = jnp.full_like(m_scr, -jnp.inf)
        l_scr[...] = jnp.zeros_like(l_scr)
        acc_scr[...] = jnp.zeros_like(acc_scr)

    k, v = _project_kv(c_ref, wkv_ref, bkv_ref, dp)      # (tile_k, Dp) each

    # per-feature scores for this chunk only: (tile_q, tile_k, Dp)
    s = q_scr[...][:, None, :] * k[None, :, :]
    if mc_pad != mc_valid:                                # static: only if padded
        s = _mask_scores(s, ki, tile_k, dp, mc_valid)

    # online (flash-style) softmax accumulation over key chunks
    m_prev = m_scr[...]
    m_new = jnp.maximum(m_prev, jnp.max(s, axis=1))       # (tile_q, Dp)
    alpha = jnp.exp(m_prev - m_new)
    e = jnp.exp(s - m_new[:, None, :])                     # (tile_q, tile_k, Dp)
    l_scr[...] = alpha * l_scr[...] + jnp.sum(e, axis=1)
    acc_scr[...] = alpha * acc_scr[...] + jnp.sum(e * v[None, :, :], axis=1)
    m_scr[...] = m_new

    @pl.when(ki == pl.num_programs(1) - 1)
    def _finalize():
        inv = pl.reciprocal(l_scr[...], approx=False)
        o_ref[...] = (acc_scr[...] * inv).astype(o_ref.dtype)


# ----------------------------- wrapper -------------------------------------- #

@functools.partial(jax.jit, static_argnames=("n_head",))
def topo_cross_attention(params, x, c, *, n_head):
    """Forward pass of topo_CrossAttention. x, c: (B, N, D) or (M, D)."""
    shape = x.shape
    D = shape[-1]
    df = D // n_head
    scale = 1.0 / math.sqrt(df)

    x2 = x.reshape(-1, D)
    c2 = c.reshape(-1, D)
    Mx, Mc = x2.shape[0], c2.shape[0]

    # ---- lane-dense feature padding (features are independent channels; padded
    #      channels have zero weights/bias, hence exactly-zero outputs) ----
    Dp = _round_up(D, 128)
    pf = Dp - D
    wq = jnp.pad(params["wq"], ((0, pf), (0, pf)))
    wk = jnp.pad(params["wk"], ((0, pf), (0, pf)))
    wv = jnp.pad(params["wv"], ((0, pf), (0, pf)))
    bq = jnp.pad(params["bq"], ((0, 0), (0, pf)))
    bk = jnp.pad(params["bk"], ((0, 0), (0, pf)))
    bv = jnp.pad(params["bv"], ((0, 0), (0, pf)))
    wkv = jnp.concatenate([wk, wv], axis=1)            # (Dp, 2*Dp)
    bkv = jnp.concatenate([bk, bv], axis=1)            # (1, 2*Dp)

    # ---- tile sizes (clamped to the problem; sized for a v7x-safe VMEM budget) ----
    tile_k = min(128, _round_up(Mc, 8))
    Mc_pad = _round_up(Mc, tile_k)
    nk = Mc_pad // tile_k

    score_budget = 4 * 1024 * 1024                     # bytes for one (tq,tk,Dp) f32 block
    tq_cap = max(8, (score_budget // (tile_k * Dp * 4)) // 8 * 8)
    tile_q = min(128, tq_cap, _round_up(Mx, 8))
    Mx_pad = _round_up(Mx, tile_q)
    nq = Mx_pad // tile_q

    xp = jnp.pad(x2, ((0, Mx_pad - Mx), (0, pf)))
    cp = jnp.pad(c2, ((0, Mc_pad - Mc), (0, pf)))

    # rough VMEM requirement (double-buffered blocks + scratch + live score copies)
    est_vmem = 4 * (2 * tile_q * Dp + 2 * tile_k * Dp
                    + 2 * (Dp * Dp + Dp) + 2 * (2 * Dp * Dp + 2 * Dp)
                    + 2 * tile_q * Dp
                    + 4 * tile_q * Dp
                    + 4 * tile_q * tile_k * Dp)
    vmem_limit = int(min(max(2 * est_vmem, 16 * 1024 * 1024), 48 * 1024 * 1024))

    cost = pl.CostEstimate(
        flops=int(2 * Mx_pad * Dp * Dp                       # Q projection
                  + 2 * nq * Mc_pad * Dp * (2 * Dp)          # K|V projection
                  + 7 * Mx_pad * Mc_pad * Dp),               # elementwise softmax math
        transcendentals=int(Mx_pad * Mc_pad * Dp + Mx_pad * Dp),
        bytes_accessed=int(4 * (Mx_pad * Dp + nq * Mc_pad * Dp
                                + 3 * Dp * Dp + 3 * Dp + Mx_pad * Dp)),
    )

    weight_specs = [
        pl.BlockSpec((Dp, Dp), lambda *idx: (0, 0)),        # Wq   (resident)
        pl.BlockSpec((1, Dp), lambda *idx: (0, 0)),         # bq
        pl.BlockSpec((Dp, 2 * Dp), lambda *idx: (0, 0)),    # Wk|Wv
        pl.BlockSpec((1, 2 * Dp), lambda *idx: (0, 0)),     # bk|bv
    ]

    if nk == 1:
        # ---- fast path: whole key set in one chunk, direct softmax ----
        kernel = functools.partial(_single_chunk_kernel, scale=scale, dp=Dp,
                                   tile_k=tile_k, mc_valid=Mc)
        out_p = pl.pallas_call(
            kernel,
            out_shape=jax.ShapeDtypeStruct((Mx_pad, Dp), x.dtype),
            grid_spec=pltpu.PrefetchScalarGridSpec(
                num_scalar_prefetch=0,
                grid=(nq,),
                in_specs=[
                    pl.BlockSpec((tile_q, Dp), lambda qi: (qi, 0)),   # x tile
                    pl.BlockSpec((tile_k, Dp), lambda qi: (0, 0)),    # all keys
                ] + weight_specs,
                out_specs=pl.BlockSpec((tile_q, Dp), lambda qi: (qi, 0)),
            ),
            compiler_params=pltpu.CompilerParams(
                dimension_semantics=("parallel",),
                vmem_limit_bytes=vmem_limit,
            ),
            cost_estimate=cost,
        )(xp, cp, wq, bq, wkv, bkv)
    else:
        # ---- general path: online softmax over key chunks ----
        kernel = functools.partial(_multi_chunk_kernel, scale=scale, dp=Dp,
                                   tile_k=tile_k, mc_valid=Mc, mc_pad=Mc_pad)
        out_p = pl.pallas_call(
            kernel,
            out_shape=jax.ShapeDtypeStruct((Mx_pad, Dp), x.dtype),
            grid_spec=pltpu.PrefetchScalarGridSpec(
                num_scalar_prefetch=0,
                grid=(nq, nk),
                in_specs=[
                    pl.BlockSpec((tile_q, Dp), lambda qi, ki: (qi, 0)),   # x tile
                    pl.BlockSpec((tile_k, Dp), lambda qi, ki: (ki, 0)),   # c chunk
                ] + weight_specs,
                out_specs=pl.BlockSpec((tile_q, Dp), lambda qi, ki: (qi, 0)),
                scratch_shapes=[
                    pltpu.VMEM((tile_q, Dp), jnp.float32),   # Q (scaled)
                    pltpu.VMEM((tile_q, Dp), jnp.float32),   # running max
                    pltpu.VMEM((tile_q, Dp), jnp.float32),   # running denom
                    pltpu.VMEM((tile_q, Dp), jnp.float32),   # running numerator
                ],
            ),
            compiler_params=pltpu.CompilerParams(
                dimension_semantics=("parallel", "arbitrary"),
                vmem_limit_bytes=vmem_limit,
            ),
            cost_estimate=cost,
        )(xp, cp, wq, bq, wkv, bkv)

    out = out_p[:Mx, :D]
    if len(shape) == 3:
        out = out.reshape(shape)
    return out


# ----------------------------- reference (pure JAX) ------------------------- #

def _reference(params, x, c, *, n_head):
    shape = x.shape
    D = shape[-1]
    df = D // n_head
    x2 = x.reshape(-1, D)
    c2 = c.reshape(-1, D)
    Q = x2 @ params["wq"] + params["bq"][0]
    K = c2 @ params["wk"] + params["bk"][0]
    V = c2 @ params["wv"] + params["bv"][0]
    Y = Q[:, None, :] * K[None, :, :] / math.sqrt(df)    # (Mx, Mc, D)
    attn = jax.nn.softmax(Y, axis=1)
    out = jnp.sum(attn * V[None, :, :], axis=1)
    if len(shape) == 3:
        out = out.reshape(shape)
    return out


# ----------------------------- main ------------------------------------------ #

if __name__ == "__main__":
    B, N, xdim, n_head = 2, 8, 32, 4
    key = jax.random.PRNGKey(0)
    kx, kc, kq, kk, kv, kbq, kbk, kbv = jax.random.split(key, 8)

    x = jax.random.normal(kx, (B, N, xdim), dtype=jnp.float32)
    c = jax.random.normal(kc, (B, N, xdim), dtype=jnp.float32)

    # deterministic Linear parameters, stored as (in, out); biases as (1, out)
    s = 1.0 / math.sqrt(xdim)
    params = {
        "wq": jax.random.uniform(kq, (xdim, xdim), jnp.float32, -s, s),
        "wk": jax.random.uniform(kk, (xdim, xdim), jnp.float32, -s, s),
        "wv": jax.random.uniform(kv, (xdim, xdim), jnp.float32, -s, s),
        "bq": jax.random.uniform(kbq, (1, xdim), jnp.float32, -s, s),
        "bk": jax.random.uniform(kbk, (1, xdim), jnp.float32, -s, s),
        "bv": jax.random.uniform(kbv, (1, xdim), jnp.float32, -s, s),
    }

    out = jax.block_until_ready(
        topo_cross_attention(params, x, c, n_head=n_head))
    ref = jax.block_until_ready(_reference(params, x, c, n_head=n_head))

    assert out.shape == (B, N, xdim)
    assert jnp.allclose(out, ref, atol=1e-5, rtol=1e-5), "mismatch vs reference"
    print("KERNEL_OK")
</pallas_src>

<mosaic_0001>
module attributes {stable_mosaic.version = 11 : i64} {
  func.func @_single_chunk_kernel(%arg0: i32, %arg1: memref<16x128xf32, #tpu.memory_space<vmem>>, %arg2: memref<16x128xf32, #tpu.memory_space<vmem>>, %arg3: memref<128x128xf32, #tpu.memory_space<vmem>>, %arg4: memref<1x128xf32, #tpu.memory_space<vmem>>, %arg5: memref<128x256xf32, #tpu.memory_space<vmem>>, %arg6: memref<1x256xf32, #tpu.memory_space<vmem>>, %arg7: memref<16x128xf32, #tpu.memory_space<vmem>>) attributes {dimension_semantics = [#tpu.dimension_semantics<parallel>], iteration_bounds = array<i64: 1>, scalar_prefetch = 0 : i64, scratch_operands = 0 : i64, tpu.core_type = #tpu.core_type<tc>, window_params = [{transform_indices = @transform_0, window_bounds = array<i64: 16, 128>}, {pipeline_mode = #tpu.pipeline_mode<synchronous>, transform_indices = @transform_1, window_bounds = array<i64: 16, 128>}, {pipeline_mode = #tpu.pipeline_mode<synchronous>, transform_indices = @transform_2, window_bounds = array<i64: 128, 128>}, {pipeline_mode = #tpu.pipeline_mode<synchronous>, transform_indices = @transform_3, window_bounds = array<i64: 1, 128>}, {pipeline_mode = #tpu.pipeline_mode<synchronous>, transform_indices = @transform_4, window_bounds = array<i64: 128, 256>}, {pipeline_mode = #tpu.pipeline_mode<synchronous>, transform_indices = @transform_5, window_bounds = array<i64: 1, 256>}, {transform_indices = @transform_6, window_bounds = array<i64: 16, 128>}]} {
    %c0 = arith.constant 0 : index
    %c0_0 = arith.constant 0 : index
    %0 = vector.load %arg1[%c0, %c0_0] : memref<16x128xf32, #tpu.memory_space<vmem>>, vector<16x128xf32>
    %c0_1 = arith.constant 0 : index
    %c0_2 = arith.constant 0 : index
    %1 = vector.load %arg3[%c0_1, %c0_2] : memref<128x128xf32, #tpu.memory_space<vmem>>, vector<128x128xf32>
    %cst = arith.constant dense<0.000000e+00> : vector<16x128xf32>
    %2 = tpu.matmul %0, %1, %cst {dimension_numbers = #tpu.dot_dimension_numbers<[1], [0], [0], [1], [0, 0, 1, 1], [], []>} : vector<16x128xf32>, vector<128x128xf32>, vector<16x128xf32> -> vector<16x128xf32>
    %c0_3 = arith.constant 0 : index
    %c0_4 = arith.constant 0 : index
    %3 = vector.load %arg4[%c0_3, %c0_4] : memref<1x128xf32, #tpu.memory_space<vmem>>, vector<1x128xf32>
    %4 = vector.broadcast %3 : vector<1x128xf32> to vector<16x128xf32>
    %5 = arith.addf %2, %4 : vector<16x128xf32>
    %cst_5 = arith.constant 0.353553385 : f32
    %6 = vector.broadcast %cst_5 : f32 to vector<16x128xf32>
    %7 = arith.mulf %5, %6 : vector<16x128xf32>
    %c0_6 = arith.constant 0 : index
    %c0_7 = arith.constant 0 : index
    %8 = vector.load %arg2[%c0_6, %c0_7] : memref<16x128xf32, #tpu.memory_space<vmem>>, vector<16x128xf32>
    %c0_8 = arith.constant 0 : index
    %c0_9 = arith.constant 0 : index
    %9 = vector.load %arg5[%c0_8, %c0_9] : memref<128x256xf32, #tpu.memory_space<vmem>>, vector<128x256xf32>
    %cst_10 = arith.constant dense<0.000000e+00> : vector<16x256xf32>
    %10 = tpu.matmul %8, %9, %cst_10 {dimension_numbers = #tpu.dot_dimension_numbers<[1], [0], [0], [1], [0, 0, 1, 1], [], []>} : vector<16x128xf32>, vector<128x256xf32>, vector<16x256xf32> -> vector<16x256xf32>
    %c0_11 = arith.constant 0 : index
    %c0_12 = arith.constant 0 : index
    %11 = vector.load %arg6[%c0_11, %c0_12] : memref<1x256xf32, #tpu.memory_space<vmem>>, vector<1x256xf32>
    %12 = vector.broadcast %11 : vector<1x256xf32> to vector<16x256xf32>
    %13 = arith.addf %10, %12 : vector<16x256xf32>
    %14 = vector.extract_strided_slice %13 {offsets = [0, 0], sizes = [16, 128], strides = [1, 1]} : vector<16x256xf32> to vector<16x128xf32>
    %15 = vector.extract_strided_slice %13 {offsets = [0, 128], sizes = [16, 128], strides = [1, 1]} : vector<16x256xf32> to vector<16x128xf32>
    %16 = vector.shape_cast %7 : vector<16x128xf32> to vector<16x1x128xf32>
    %17 = vector.shape_cast %14 : vector<16x128xf32> to vector<1x16x128xf32>
    %18 = vector.broadcast %16 : vector<16x1x128xf32> to vector<16x16x128xf32>
    %19 = vector.broadcast %17 : vector<1x16x128xf32> to vector<16x16x128xf32>
    %20 = arith.mulf %18, %19 : vector<16x16x128xf32>
    %cst_13 = arith.constant dense<0xFF800000> : vector<16x128xf32>
    %21 = vector.multi_reduction <maximumf>, %20, %cst_13 [1] : vector<16x16x128xf32> to vector<16x128xf32>
    %22 = vector.shape_cast %21 : vector<16x128xf32> to vector<16x1x128xf32>
    %23 = vector.broadcast %22 : vector<16x1x128xf32> to vector<16x16x128xf32>
    %24 = arith.subf %20, %23 : vector<16x16x128xf32>
    %25 = math.exp %24 : vector<16x16x128xf32>
    %cst_14 = arith.constant dense<0.000000e+00> : vector<16x128xf32>
    %26 = vector.multi_reduction <add>, %25, %cst_14 [1] : vector<16x16x128xf32> to vector<16x128xf32>
    %27 = vector.shape_cast %15 : vector<16x128xf32> to vector<1x16x128xf32>
    %28 = vector.broadcast %27 : vector<1x16x128xf32> to vector<16x16x128xf32>
    %29 = arith.mulf %25, %28 : vector<16x16x128xf32>
    %cst_15 = arith.constant dense<0.000000e+00> : vector<16x128xf32>
    %30 = vector.multi_reduction <add>, %29, %cst_15 [1] : vector<16x16x128xf32> to vector<16x128xf32>
    %31 = tpu.reciprocal %26 : vector<16x128xf32> -> vector<16x128xf32>
    %32 = arith.mulf %30, %31 : vector<16x128xf32>
    %c0_16 = arith.constant 0 : index
    %c0_17 = arith.constant 0 : index
    %33 = vector.load %arg7[%c0_16, %c0_17] : memref<16x128xf32, #tpu.memory_space<vmem>>, vector<16x128xf32>
    tpu.vector_store %arg7[%c0_16, %c0_17], %32 {strides = array<i32>} : memref<16x128xf32, #tpu.memory_space<vmem>>, vector<16x128xf32>,
    return
  }
  func.func @transform_0(%arg0: i32) -> (i32, i32) {
    %c0_i32 = arith.constant 0 : i32
    %c0_i32_0 = arith.constant 0 : i32
    return %arg0, %c0_i32 : i32, i32
  }
  func.func @transform_1(%arg0: i32) -> (i32, i32) {
    %c0_i32 = arith.constant 0 : i32
    %c0_i32_0 = arith.constant 0 : i32
    %c0_i32_1 = arith.constant 0 : i32
    return %c0_i32, %c0_i32_0 : i32, i32
  }
  func.func @transform_2(%arg0: i32) -> (i32, i32) {
    %c0_i32 = arith.constant 0 : i32
    %c0_i32_0 = arith.constant 0 : i32
    %c0_i32_1 = arith.constant 0 : i32
    return %c0_i32, %c0_i32_0 : i32, i32
  }
  func.func @transform_3(%arg0: i32) -> (i32, i32) {
    %c0_i32 = arith.constant 0 : i32
    %c0_i32_0 = arith.constant 0 : i32
    %c0_i32_1 = arith.constant 0 : i32
    return %c0_i32, %c0_i32_0 : i32, i32
  }
  func.func @transform_4(%arg0: i32) -> (i32, i32) {
    %c0_i32 = arith.constant 0 : i32
    %c0_i32_0 = arith.constant 0 : i32
    %c0_i32_1 = arith.constant 0 : i32
    return %c0_i32, %c0_i32_0 : i32, i32
  }
  func.func @transform_5(%arg0: i32) -> (i32, i32) {
    %c0_i32 = arith.constant 0 : i32
    %c0_i32_0 = arith.constant 0 : i32
    %c0_i32_1 = arith.constant 0 : i32
    return %c0_i32, %c0_i32_0 : i32, i32
  }
  func.func @transform_6(%arg0: i32) -> (i32, i32) {
    %c0_i32 = arith.constant 0 : i32
    %c0_i32_0 = arith.constant 0 : i32
    return %arg0, %c0_i32 : i32, i32
  }
}

</mosaic_0001>

<bundles_post_ra>
// kernel: topo_cross_attention.1
= control target key start
LH: loop header
LB: loop body
LE: loop exit
PB: predicated region body
PF: predicated region fallthrough
CT: control target
= control target key end

     0   :  { %v1153_v2 = vmov 0.0   ;;  %v161_v54 = vlaneseq  ;;  %v1154_v55 = vmov 1966171168   ;;  %vm972_vm0 = vcmask 1041409   ;;  %s1837_s2 = inlined_call_operand.vmem [shape: f32[128,128], index: 2, kind: input, shape index: {}]   ;;  %s1838_s4 = inlined_call_operand.vmem [shape: f32[128,256], index: 4, kind: input, shape index: {}]   ;;  %s1839_s0 = inlined_call_operand.vmem [shape: f32[16,128], index: 0, kind: input, shape index: {}]   ;;  %s1840_s1 = inlined_call_operand.vmem [shape: f32[16,128], index: 1, kind: input, shape index: {}]   ;;  %s1841_s3 = inlined_call_operand.vmem [shape: f32[1,128], index: 3, kind: input, shape index: {}]   ;;  %s1842_s5 = inlined_call_operand.vmem [shape: f32[1,256], index: 5, kind: input, shape index: {}]   ;;  %s1843_s6 = inlined_call_operand.vmem [shape: f32[16,128], index: 6, kind: output, shape index: {}]  }
   0x1   :  { %v40_v0 = vld [vmem:[%s1837_s2 + $0x78] sm:$0xff]  ;;  %v39_v1 = vld [vmem:[%s1837_s2 + $0x70] sm:$0xff]  ;;  %235 = vmatprep.mubr.f32.mxu1 %v1153_v2  ;;  %v38_v5 = vld [vmem:[%s1837_s2 + $0x68] sm:$0xff]  ;;  %v252_v56 = vunpack.c.l.s4 %v1154_v55  ;;  %vm974_vm1 = vcmask 1042434   ;;  %vm976_vm2 = vcmask 1043459   ;;  %vm978_vm3 = vcmask 1044484  }
   0x2   :  { %1020 = vmatprep.subr.mxu0 %v40_v0  ;;  %v158_v3 = vld [vmem:[%s1838_s4 + $0xf8] sm:$0xff]  ;;  %v157_v4 = vld [vmem:[%s1838_s4 + $0xf0] sm:$0xff]  ;;  %v156_v6 = vld [vmem:[%s1838_s4 + $0xe8] sm:$0xff]  ;;  %v162_v59 = vshrl.u32 %v161_v54, 7  ;;  %vm980_vm4 = vcmask 1045509   ;;  %vm982_vm5 = vcmask 1046534  }
   0x3   :  { %1021 = vmatpush3.msra.mxu0 %v40_v0  ;;  %171 = vmatprep.subr.mxu1 %v158_v3  ;;  %v155_v7 = vld [vmem:[%s1838_s4 + $0xe0] sm:$0xff]  ;;  %v154_v8 = vld [vmem:[%s1838_s4 + $0xd8] sm:$0xff]  ;;  %v153_v10 = vld [vmem:[%s1838_s4 + $0xd0] sm:$0xff]  ;;  %v253_v60 = vunpack.c.0.s8 %v252_v56  ;;  %vm984_vm6 = vcmask 1047559  }
   0x4   :  { %1022 = vmatprep.subr.mxu0 %v39_v1  ;;  %172 = vmatpush1.msra.mxu1 %v157_v4  ;;  %v37_v9 = vld [vmem:[%s1837_s2 + $0x60] sm:$0xff]  ;;  %v152_v11 = vld [vmem:[%s1838_s4 + $0xc8] sm:$0xff]  ;;  %v36_v12 = vld [vmem:[%s1837_s2 + $0x58] sm:$0xff] }
   0x5   :  { %1023 = vmatpush3.msra.mxu0 %v39_v1  ;;  %173 = vmatprep.subr.mxu1 %v156_v6  ;;  %v151_v13 = vld [vmem:[%s1838_s4 + $0xc0] sm:$0xff]  ;;  %v150_v14 = vld [vmem:[%s1838_s4 + $0xb8] sm:$0xff]  ;;  %v35_v15 = vld [vmem:[%s1837_s2 + $0x50] sm:$0xff]  ;;  %v256_v1 = vsub.s32 %v253_v60, %v162_v59  ;;  %v1351_v6 = vsub.s32 0, %v162_v59 }
   0x6   :  { %1024 = vmatprep.subr.mxu0 %v38_v5  ;;  %174 = vmatpush1.msra.mxu1 %v155_v7  ;;  %v149_v16 = vld [vmem:[%s1838_s4 + $0xb0] sm:$0xff]  ;;  %v148_v17 = vld [vmem:[%s1838_s4 + $0xa8] sm:$0xff]  ;;  %v147_v19 = vld [vmem:[%s1838_s4 + $0xa0] sm:$0xff] }
   0x7   :  { %1025 = vmatpush3.msra.mxu0 %v38_v5  ;;  %175 = vmatprep.subr.mxu1 %v154_v8  ;;  %v34_v18 = vld [vmem:[%s1837_s2 + $0x48] sm:$0xff]  ;;  %v146_v20 = vld [vmem:[%s1838_s4 + $0x98] sm:$0xff]  ;;  %v33_v21 = vld [vmem:[%s1837_s2 + $0x40] sm:$0xff] }
   0x8   :  { %1026 = vmatprep.subr.mxu0 %v37_v9  ;;  %176 = vmatpush1.msra.mxu1 %v153_v10  ;;  %v145_v22 = vld [vmem:[%s1838_s4 + $0x90] sm:$0xff]  ;;  %v144_v23 = vld [vmem:[%s1838_s4 + $0x88] sm:$0xff]  ;;  %v32_v24 = vld [vmem:[%s1837_s2 + $0x38] sm:$0xff] }
   0x9   :  { %1027 = vmatpush3.msra.mxu0 %v37_v9  ;;  %177 = vmatprep.subr.mxu1 %v152_v11  ;;  %v143_v25 = vld [vmem:[%s1838_s4 + $0x80] sm:$0xff]  ;;  %v142_v26 = vld [vmem:[%s1838_s4 + $0x78] sm:$0xff]  ;;  %v31_v27 = vld [vmem:[%s1837_s2 + $0x30] sm:$0xff] }
   0xa   :  { %1028 = vmatprep.subr.mxu0 %v36_v12  ;;  %178 = vmatpush1.msra.mxu1 %v151_v13  ;;  %v141_v28 = vld [vmem:[%s1838_s4 + $0x70] sm:$0xff]  ;;  %v140_v29 = vld [vmem:[%s1838_s4 + $0x68] sm:$0xff]  ;;  %v139_v31 = vld [vmem:[%s1838_s4 + $0x60] sm:$0xff] }
   0xb   :  { %1029 = vmatpush3.msra.mxu0 %v36_v12  ;;  %179 = vmatprep.subr.mxu1 %v150_v14  ;;  %v30_v30 = vld [vmem:[%s1837_s2 + $0x28] sm:$0xff]  ;;  %v138_v32 = vld [vmem:[%s1838_s4 + $0x58] sm:$0xff]  ;;  %v29_v33 = vld [vmem:[%s1837_s2 + $0x20] sm:$0xff] }
   0xc   :  { %1030 = vmatprep.subr.mxu0 %v35_v15  ;;  %180 = vmatpush1.msra.mxu1 %v149_v16  ;;  %v137_v34 = vld [vmem:[%s1838_s4 + $0x50] sm:$0xff]  ;;  %v136_v35 = vld [vmem:[%s1838_s4 + $0x48] sm:$0xff]  ;;  %v28_v36 = vld [vmem:[%s1837_s2 + $0x18] sm:$0xff]  ;;  %v167_v16 = vsub.s32 1, %v162_v59 }
   0xd   :  { %1031 = vmatpush3.msra.mxu0 %v35_v15  ;;  %181 = vmatprep.subr.mxu1 %v148_v17  ;;  %v135_v37 = vld [vmem:[%s1838_s4 + $0x40] sm:$0xff]  ;;  %v134_v38 = vld [vmem:[%s1838_s4 + $0x38] sm:$0xff]  ;;  %v27_v39 = vld [vmem:[%s1837_s2 + $0x10] sm:$0xff] }
   0xe   :  { %1032 = vmatprep.subr.mxu0 %v34_v18  ;;  %182 = vmatpush1.msra.mxu1 %v147_v19  ;;  %v133_v40 = vld [vmem:[%s1838_s4 + $0x30] sm:$0xff]  ;;  %v132_v41 = vld [vmem:[%s1838_s4 + $0x28] sm:$0xff]  ;;  %v23_v43 = vld [vmem:[%s1839_s0] sm:$0xff] }
   0xf   :  { %1033 = vmatpush3.msra.mxu0 %v34_v18  ;;  %183 = vmatprep.subr.mxu1 %v146_v20  ;;  %v26_v42 = vld [vmem:[%s1837_s2 + $0x8] sm:$0xff]  ;;  %v131_v44 = vld [vmem:[%s1838_s4 + $0x20] sm:$0xff]  ;;  %v130_v46 = vld [vmem:[%s1838_s4 + $0x18] sm:$0xff] }
  0x10   :  { %1034 = vmatprep.subr.mxu0 %v33_v21  ;;  %184 = vmatpush1.msra.mxu1 %v145_v22  ;;  %v25_v45 = vld [vmem:[%s1837_s2] sm:$0xff]  ;;  %v129_v47 = vld [vmem:[%s1838_s4 + $0x10] sm:$0xff]  ;;  %v24_v48 = vld [vmem:[%s1839_s0 + $0x8] sm:$0xff] }
  0x11   :  { %1035 = vmatpush3.msra.mxu0 %v33_v21  ;;  %185 = vmatprep.subr.mxu1 %v144_v23  ;;  %v128_v49 = vld [vmem:[%s1838_s4 + $0x8] sm:$0xff]  ;;  %v127_v50 = vld [vmem:[%s1838_s4] sm:$0xff] }
  0x12   :  { %1036 = vmatprep.subr.mxu0 %v32_v24  ;;  %186 = vmatpush1.msra.mxu1 %v143_v25  ;;  %v125_v51 = vld [vmem:[%s1840_s1] sm:$0xff]  ;;  %v126_v52 = vld [vmem:[%s1840_s1 + $0x8] sm:$0xff] }
  0x13   :  { %1037 = vmatpush3.msra.mxu0 %v32_v24  ;;  %187 = vmatprep.subr.mxu1 %v142_v26  ;;  %v1001_v53 = vld [vmem:[%s1841_s3] ss:$0 sm:$0xff] }
  0x14   :  { %1038 = vmatprep.subr.mxu0 %v31_v27  ;;  %188 = vmatpush1.msra.mxu1 %v141_v28  ;;  %v159_v9 = vld [vmem:[%s1842_s5] sm:$0x3] }
  0x15   :  { %1039 = vmatpush3.msra.mxu0 %v31_v27  ;;  %189 = vmatprep.subr.mxu1 %v140_v29  ;;  %v164_v18 = vrot.slane %v159_v9, %v1351_v6  ;;  %v1357_v26 = vrot.slane %v159_v9, %v167_v16 }
  0x16   :  { %1040 = vmatprep.subr.mxu0 %v30_v30  ;;  %190 = vmatpush1.msra.mxu1 %v139_v31 }
  0x17   :  { %1041 = vmatpush3.msra.mxu0 %v30_v30  ;;  %191 = vmatprep.subr.mxu1 %v138_v32  ;;  %1869 = vst [vmem:[#allocation2_spill] sm:$0xff] %v1357_v26 }
  0x18   :  { %1042 = vmatprep.subr.mxu0 %v29_v33  ;;  %192 = vmatpush1.msra.mxu1 %v137_v34 }
  0x19   :  { %1043 = vmatpush3.msra.mxu0 %v29_v33  ;;  %193 = vmatprep.subr.mxu1 %v136_v35 }
  0x1a   :  { %1044 = vmatprep.subr.mxu0 %v28_v36  ;;  %194 = vmatpush1.msra.mxu1 %v135_v37 }
  0x1b   :  { %1045 = vmatpush3.msra.mxu0 %v28_v36  ;;  %195 = vmatprep.subr.mxu1 %v134_v38 }
  0x1c   :  { %1046 = vmatprep.subr.mxu0 %v27_v39  ;;  %196 = vmatpush1.msra.mxu1 %v133_v40 }
  0x1d   :  { %1047 = vmatpush3.msra.mxu0 %v27_v39  ;;  %197 = vmatprep.subr.mxu1 %v132_v41 }
  0x1e   :  { %1048 = vmatprep.subr.mxu0 %v26_v42  ;;  %1052 = vmatprep.mubr.f32.mxu0 %v23_v43 }
  0x1f   :  { %1049 = vmatpush3.msra.mxu0 %v26_v42  ;;  %198 = vmatpush1.msra.mxu1 %v131_v44 }
  0x20   :  { %1050 = vmatprep.subr.mxu0 %v25_v45  ;;  %199 = vmatprep.subr.mxu1 %v130_v46 }
  0x21   :  { %1051 = vmatpush3.msra.mxu0 %v25_v45  ;;  %200 = vmatpush1.msra.mxu1 %v129_v47 }
  0x22   :  { %1053 = vmatmul.mubr.f32.vlgmr.msra.gmra.mxu0 %v24_v48  ;;  %201 = vmatprep.subr.mxu1 %v128_v49 }
  0x23   :  { %202 = vmatpush1.msra.mxu1 %v127_v50 }
  0x24   :  { %236 = vmatmul.mubr.f32.vlgmr.msra.gmra.mxu1 %v125_v51 }
  0x25   :  { %241 = vmatprep.mubr.f32.mxu1 %v1153_v2 }
  0x28   :  { %242 = vmatmul.mubr.f32.gmra.mxu1 %v126_v52 }
  0xe2   :  { %v1054_v57 = vpop.f32.mrf.mxu0 }
  0xe3   :  { %v120_v58 = vadd.f32 %v1054_v57, %v1001_v53 }
  0xe4   :  { %v114_v61 = vpop.f32.mrf.mxu0  ;;  %v237_v5 = vpop.f32.mrf.mxu1 }
  0xe5   :  { %v115_v62 = vadd.f32 %v1001_v53, %v114_v61  ;;  %v124_v63 = vmul.f32 0.35355338, %v120_v58  ;;  %v238_v29 = vadd.f32 %v237_v5, %v164_v18 }
  0xe6   :  { %v239_v14 = vpop.f32.mrf.mxu1 }
  0xe7   :  { %v123_v0 = vmul.f32 0.35355338, %v115_v62  ;;  %v299_v3 = vcombine.high %v124_v63, %v124_v63  ;;  %v306_v10 = vrot.slane %v124_v63, %v256_v1  ;;  %v1369_v41 = vadd.f32 %v239_v14, %v1357_v26 }
  0xe8   :  { %v243_v23 = vpop.f32.mrf.mxu1 }
  0xe9   :  { %v250_v2 = vcombine.high %v123_v0, %v123_v0  ;;  %v257_v4 = vrot.slane %v123_v0, %v256_v1  ;;  %v313_v11 = vrot.slane %v299_v3, %v256_v1  ;;  %v314_v20 = vcombine.high %v306_v10, %v306_v10  ;;  %1870 = vst [vmem:[#allocation3_spill] sm:$0xff] %v1369_v41 }
  0xea   :  { %v322_v27 = vrot.slane %v306_v10, %v256_v1  ;;  %v1361_v33 = vadd.f32 %v243_v23, %v164_v18 }
  0xeb   :  { %v264_v7 = vrot.slane %v250_v2, %v256_v1  ;;  %v265_v8 = vcombine.high %v257_v4, %v257_v4  ;;  %v273_v13 = vrot.slane %v257_v4, %v256_v1  ;;  %v315_v21 = vcombine.high %v313_v11, %v313_v11 }
  0xec   :  { %v329_v30 = vrot.slane %v313_v11, %v256_v1  ;;  %v336_v34 = vrot.slane %v314_v20, %v256_v1  ;;  %v344_v42 = vcombine.high %v322_v27, %v322_v27  ;;  %v383_v43 = vrot.slane %v322_v27, %v1351_v6 }
  0xed   :  { %v266_v12 = vcombine.high %v264_v7, %v264_v7  ;;  %v280_v15 = vrot.slane %v264_v7, %v256_v1  ;;  %v287_v17 = vrot.slane %v265_v8, %v256_v1  ;;  %v295_v22 = vcombine.high %v273_v13, %v273_v13 }
  0xee   :  { %v351_v28 = vrot.slane %v273_v13, %v1351_v6  ;;  %v343_v35 = vrot.slane %v315_v21, %v256_v1  ;;  %v345_v46 = vcombine.high %v329_v30, %v329_v30  ;;  %v346_v50 = vcombine.high %v336_v34, %v336_v34 }
  0xef   :  { %v294_v19 = vrot.slane %v266_v12, %v256_v1  ;;  %v296_v24 = vcombine.high %v280_v15, %v280_v15  ;;  %v297_v25 = vcombine.high %v287_v17, %v287_v17  ;;  %v355_v32 = vrot.slane %v287_v17, %v1351_v6 }
  0xf0   :  { %v359_v36 = vrot.slane %v295_v22, %v1351_v6  ;;  %v367_v37 = vrot.slane %v280_v15, %v1351_v6  ;;  %v1372_v44 = vmul.f32 %v351_v28, %v238_v29  ;;  %v1375_v45 = vmul.f32 %v351_v28, %v1361_v33 }
  0xf1   :  { %v298_v31 = vcombine.high %v294_v19, %v294_v19  ;;  %v363_v38 = vrot.slane %v297_v25, %v1351_v6  ;;  %v371_v39 = vrot.slane %v294_v19, %v1351_v6  ;;  %v375_v40 = vrot.slane %v296_v24, %v1351_v6 }
  0xf2   :  { %v1378_v48 = vmul.f32 %v355_v32, %v238_v29  ;;  %v1381_v49 = vmul.f32 %v355_v32, %v1361_v33  ;;  %v347_v51 = vcombine.high %v343_v35, %v343_v35  ;;  %v1383_v52 = vmul.f32 %v359_v36, %v238_v29 }
  0xf3   :  { %v379_v47 = vrot.slane %v298_v31, %v1351_v6  ;;  %v1385_v53 = vmul.f32 %v367_v37, %v238_v29  ;;  %v1387_v54 = vmul.f32 %v363_v38, %v238_v29  ;;  %v1389_v55 = vmul.f32 %v371_v39, %v238_v29 }
  0xf4   :  { %v1391_v56 = vmul.f32 %v375_v40, %v238_v29  ;;  %v1394_v57 = vmul.f32 %v359_v36, %v1361_v33  ;;  %v1397_v58 = vmul.f32 %v363_v38, %v1361_v33  ;;  %v1400_v59 = vmul.f32 %v367_v37, %v1361_v33 }
  0xf5   :  { %v1403_v60 = vmul.f32 %v371_v39, %v1361_v33  ;;  %v460_v61 = vmax.f32 %v1372_v44, %v1375_v45  ;;  %v1407_v62 = vmul.f32 %v379_v47, %v238_v29  ;;  %v1410_v63 = vmul.f32 %v375_v40, %v1361_v33 }
  0xf6   :  { %v1413_v0 = vmul.f32 %v379_v47, %v1361_v33  ;;  %v467_v1 = vmax.f32 %v1378_v48, %v1381_v49  ;;  %v387_v2 = vrot.slane %v336_v34, %v1351_v6  ;;  %v391_v3 = vrot.slane %v344_v42, %v1351_v6 }
  0xf7   :  { %v395_v4 = vrot.slane %v346_v50, %v1351_v6  ;;  %v399_v5 = vrot.slane %v329_v30, %v1351_v6  ;;  %v403_v7 = vrot.slane %v343_v35, %v1351_v6  ;;  %v407_v8 = vrot.slane %v345_v46, %v1351_v6 }
  0xf8   :  { %1871 = vst [vmem:[#allocation4_spill] sm:$0xff] %v1413_v0  ;;  %v411_v9 = vrot.slane %v347_v51, %v1351_v6  ;;  %v474_v10 = vmax.f32 %v1383_v52, %v1394_v57  ;;  %v461_v11 = vrot.slane %v460_v61, 4  ;;  %v481_v12 = vmax.f32 %v1387_v54, %v1397_v58 }
  0xf9   :  { %v488_v13 = vmax.f32 %v1385_v53, %v1400_v59  ;;  %v495_v14 = vmax.f32 %v1389_v55, %v1403_v60  ;;  %v1432_v15 = vmul.f32 %v383_v43, %v238_v29  ;;  %v468_v16 = vrot.slane %v467_v1, 4 }
  0xfa   :  { %v502_v17 = vmax.f32 %v1391_v56, %v1410_v63  ;;  %v509_v6 = vmax.f32 %v1407_v62, %v1413_v0  ;;  %v1438_v18 = vmul.f32 %v387_v2, %v238_v29  ;;  %v1440_v19 = vmul.f32 %v391_v3, %v238_v29 }
  0xfb   :  { %1872 = vst [vmem:[#allocation5_spill] sm:$0xff] %v1432_v15  ;;  %v1442_v20 = vmul.f32 %v395_v4, %v238_v29  ;;  %v1444_v21 = vmul.f32 %v399_v5, %v238_v29  ;;  %v1446_v22 = vmul.f32 %v403_v7, %v238_v29  ;;  %v1448_v23 = vmul.f32 %v407_v8, %v238_v29 }
  0xfc   :  { %1873 = vst [vmem:[#allocation6_spill] sm:$0xff] %v1438_v18  ;;  %1874 = vst [vmem:[#allocation7_spill] sm:$0xff] %v1440_v19  ;;  %v1450_v24 = vmul.f32 %v411_v9, %v238_v29  ;;  %v475_v25 = vrot.slane %v474_v10, 4  ;;  %v462_v27 = vmax.f32 %v460_v61, %v461_v11  ;;  %v482_v28 = vrot.slane %v481_v12, 4 }
  0xfd   :  { %1875 = vst [vmem:[#allocation8_spill] sm:$0xff] %v1442_v20  ;;  %1876 = vst [vmem:[#allocation9_spill] sm:$0xff] %v1444_v21  ;;  %v489_v30 = vrot.slane %v488_v13, 4  ;;  %v496_v31 = vrot.slane %v495_v14, 4  ;;  %v1453_v32 = vmul.f32 %v383_v43, %v1361_v33  ;;  %v469_v34 = vmax.f32 %v467_v1, %v468_v16 }
  0xfe   :  { %1877 = vst [vmem:[#allocation10_spill] sm:$0xff] %v1446_v22  ;;  %1878 = vst [vmem:[#allocation11_spill] sm:$0xff] %v1448_v23  ;;  %v503_v35 = vrot.slane %v502_v17, 4  ;;  %v510_v36 = vrot.slane %v509_v6, 4  ;;  %v1456_v37 = vmul.f32 %v387_v2, %v1361_v33  ;;  %v1459_v38 = vmul.f32 %v391_v3, %v1361_v33 }
  0xff   :  { %1879 = vst [vmem:[#allocation12_spill] sm:$0xff] %v1450_v24  ;;  %1880 = vst [vmem:[#allocation13_spill] sm:$0xff] %v1453_v32  ;;  %v1462_v29 = vmul.f32 %v395_v4, %v1361_v33  ;;  %v1465_v39 = vmul.f32 %v399_v5, %v1361_v33  ;;  %v1468_v40 = vmul.f32 %v403_v7, %v1361_v33  ;;  %v463_v47 = vrot.slane %v462_v27, 2 }
 0x100   :  { %1881 = vst [vmem:[#allocation14_spill] sm:$0xff] %v1456_v37  ;;  %1882 = vst [vmem:[#allocation15_spill] sm:$0xff] %v1459_v38  ;;  %v1471_v42 = vmul.f32 %v407_v8, %v1361_v33  ;;  %v1474_v43 = vmul.f32 %v411_v9, %v1361_v33  ;;  %v476_v46 = vmax.f32 %v474_v10, %v475_v25  ;;  %v470_v1 = vrot.slane %v469_v34, 2 }
 0x101   :  { %1883 = vst [vmem:[#allocation16_spill] sm:$0xff] %v1462_v29  ;;  %1884 = vst [vmem:[#allocation17_spill] sm:$0xff] %v1465_v39  ;;  %v483_v50 = vmax.f32 %v481_v12, %v482_v28  ;;  %v490_v51 = vmax.f32 %v488_v13, %v489_v30  ;;  %v497_v61 = vmax.f32 %v495_v14, %v496_v31 }
 0x102   :  { %1885 = vst [vmem:[#allocation18_spill] sm:$0xff] %v1468_v40  ;;  %1886 = vst [vmem:[#allocation19_spill] sm:$0xff] %v1471_v42  ;;  %v504_v2 = vmax.f32 %v502_v17, %v503_v35  ;;  %v511_v3 = vmax.f32 %v509_v6, %v510_v36  ;;  %v516_v4 = vmax.f32 %v1432_v15, %v1453_v32  ;;  %v477_v13 = vrot.slane %v476_v46, 2 }
 0x103   :  { %1887 = vst [vmem:[#allocation20_spill] sm:$0xff] %v1474_v43  ;;  %v523_v5 = vmax.f32 %v1438_v18, %v1456_v37  ;;  %v530_v7 = vmax.f32 %v1440_v19, %v1459_v38  ;;  %v537_v33 = vmax.f32 %v1442_v20, %v1462_v29  ;;  %v544_v8 = vmax.f32 %v1444_v21, %v1465_v39 }
 0x104   :  { %v517_v9 = vrot.slane %v516_v4, 4  ;;  %v551_v10 = vmax.f32 %v1446_v22, %v1468_v40  ;;  %v558_v11 = vmax.f32 %v1448_v23, %v1471_v42  ;;  %v565_v12 = vmax.f32 %v1450_v24, %v1474_v43 }
 0x105   :  { %v484_v14 = vrot.slane %v483_v50, 2  ;;  %v524_v16 = vrot.slane %v523_v5, 4  ;;  %v531_v17 = vrot.slane %v530_v7, 4  ;;  %v491_v6 = vrot.slane %v490_v51, 2 }
 0x106   :  { %v518_v25 = vmax.f32 %v516_v4, %v517_v9  ;;  %v538_v28 = vrot.slane %v537_v33, 4  ;;  %v545_v30 = vrot.slane %v544_v8, 4  ;;  %v498_v31 = vrot.slane %v497_v61, 2 }
 0x107   :  { %v552_v35 = vrot.slane %v551_v10, 4  ;;  %v559_v36 = vrot.slane %v558_v11, 4  ;;  %v566_v41 = vrot.slane %v565_v12, 4  ;;  %v464_v26 = vmax.f32 %v462_v27, %v463_v47 }
 0x108   :  { %v505_v40 = vrot.slane %v504_v2, 2  ;;  %v525_v22 = vmax.f32 %v523_v5, %v524_v16  ;;  %v532_v39 = vmax.f32 %v530_v7, %v531_v17  ;;  %v471_v42 = vmax.f32 %v469_v34, %v470_v1 }
 0x109   :  { %v478_v23 = vmax.f32 %v476_v46, %v477_v13  ;;  %v485_v21 = vmax.f32 %v483_v50, %v484_v14  ;;  %v512_v43 = vrot.slane %v511_v3, 2  ;;  %v492_v24 = vmax.f32 %v490_v51, %v491_v6 }
 0x10a   :  { %v519_v29 = vrot.slane %v518_v25, 2  ;;  %v539_v20 = vmax.f32 %v537_v33, %v538_v28  ;;  %v546_v38 = vmax.f32 %v544_v8, %v545_v30  ;;  %v499_v19 = vmax.f32 %v497_v61, %v498_v31 }
 0x10b   :  { %v553_v4 = vmax.f32 %v551_v10, %v552_v35  ;;  %v560_v9 = vmax.f32 %v558_v11, %v559_v36  ;;  %v567_v37 = vmax.f32 %v565_v12, %v566_v41  ;;  %v465_v18 = vrot.slane %v464_v26, 1 }
 0x10c   :  { %v506_v32 = vmax.f32 %v504_v2, %v505_v40  ;;  %v526_v15 = vrot.slane %v525_v22, 2  ;;  %v533_v0 = vrot.slane %v532_v39, 2  ;;  %v472_v27 = vrot.slane %v471_v42, 1 }
 0x10d   :  { %v479_v47 = vrot.slane %v478_v23, 1  ;;  %v486_v5 = vrot.slane %v485_v21, 1  ;;  %v513_v7 = vmax.f32 %v511_v3, %v512_v43  ;;  %v493_v34 = vrot.slane %v492_v24, 1 }
 0x10e   :  { %v520_v46 = vmax.f32 %v518_v25, %v519_v29  ;;  %v540_v50 = vrot.slane %v539_v20, 2  ;;  %v547_v1 = vrot.slane %v546_v38, 2  ;;  %v500_v51 = vrot.slane %v499_v19, 1 }
 0x10f   :  { %v554_v13 = vrot.slane %v553_v4, 2  ;;  %v561_v33 = vrot.slane %v560_v9, 2  ;;  %v568_v8 = vrot.slane %v567_v37, 2  ;;  %v466_v61 = vmax.f32 %v464_v26, %v465_v18 }
 0x110   :  { %v507_v10 = vrot.slane %v506_v32, 1  ;;  %v527_v11 = vmax.f32 %v525_v22, %v526_v15  ;;  %v534_v41 = vmax.f32 %v532_v39, %v533_v0  ;;  %v473_v12 = vmax.f32 %v471_v42, %v472_v27 }
 0x111   :  { %v480_v40 = vmax.f32 %v478_v23, %v479_v47  ;;  %v487_v2 = vmax.f32 %v485_v21, %v486_v5  ;;  %v514_v14 = vrot.slane %v513_v7, 1  ;;  %v494_v16 = vmax.f32 %v492_v24, %v493_v34 }
 0x112   :  { %v521_v17 = vrot.slane %v520_v46, 1  ;;  %v541_v6 = vmax.f32 %v539_v20, %v540_v50  ;;  %v548_v43 = vmax.f32 %v546_v38, %v547_v1  ;;  %v501_v3 = vmax.f32 %v499_v19, %v500_v51 }
 0x113   :  { %v555_v29 = vmax.f32 %v553_v4, %v554_v13  ;;  %v562_v25 = vmax.f32 %v560_v9, %v561_v33  ;;  %v569_v28 = vmax.f32 %v567_v37, %v568_v8  ;;  %v1492_v30 = vmax.f32 %v506_v32, %v507_v10  ;;  %v1888_v33 = vld [vmem:[#allocation4_spill] sm:$0xff]  ;;  %v1889_v8 = vld [vmem:[#allocation5_spill] sm:$0xff] }
 0x114   :  { %v528_v31 = vrot.slane %v527_v11, 1  ;;  %v535_v35 = vrot.slane %v534_v41, 1  ;;  %v572_v26 = vsub.f32 %v1372_v44, %v466_v61  ;;  %v1495_v15 = vmax.f32 %v513_v7, %v514_v14 }
 0x115   :  { %v573_v0 = vsub.f32 %v1375_v45, %v466_v61  ;;  %v574_v18 = vsub.f32 %v1378_v48, %v473_v12  ;;  %v575_v21 = vsub.f32 %v1381_v49, %v473_v12  ;;  %v1500_v20 = vmax.f32 %v520_v46, %v521_v17  ;;  %v1894_v17 = vld [vmem:[#allocation15_spill] sm:$0xff] }
 0x116   :  { %v542_v19 = vrot.slane %v541_v6, 1  ;;  %v549_v22 = vrot.slane %v548_v43, 1  ;;  %v576_v23 = vsub.f32 %v1383_v52, %v480_v40  ;;  %v556_v24 = vrot.slane %v555_v29, 1 }
 0x117   :  { %v563_v32 = vrot.slane %v562_v25, 1  ;;  %v570_v37 = vrot.slane %v569_v28, 1  ;;  %v577_v38 = vsub.f32 %v1394_v57, %v480_v40  ;;  %v1504_v44 = vmax.f32 %v527_v11, %v528_v31 }
 0x118   :  { %v1506_v39 = vmax.f32 %v534_v41, %v535_v35  ;;  %v578_v45 = vsub.f32 %v1387_v54, %v487_v2  ;;  %v604_v48 = vmul.f32 1.442695, %v572_v26  ;;  %v579_v49 = vsub.f32 %v1397_v58, %v487_v2  ;;  %v1891_v41 = vld [vmem:[#allocation6_spill] sm:$0xff]  ;;  %v1893_v2 = vld [vmem:[#allocation7_spill] sm:$0xff]  ;;  %v1898_v26 = vld [vmem:[#allocation17_spill] sm:$0xff] }
 0x119   :  { %v606_v42 = vmul.f32 1.442695, %v573_v0  ;;  %v608_v36 = vmul.f32 1.442695, %v574_v18  ;;  %v610_v4 = vmul.f32 1.442695, %v575_v21  ;;  %v1510_v9 = vmax.f32 %v541_v6, %v542_v19 }
 0x11a   :  { %v580_v52 = vsub.f32 %v1385_v53, %v494_v16  ;;  %1057 = vpow2.f32 %v604_v48  ;;  %v612_v27 = vmul.f32 1.442695, %v576_v23  ;;  %v1513_v47 = vmax.f32 %v548_v43, %v549_v22  ;;  %v1895_v43 = vld [vmem:[#allocation8_spill] sm:$0xff]  ;;  %v1899_v0 = vld [vmem:[#allocation10_spill] sm:$0xff]  ;;  %v1901_v23 = vld [vmem:[#allocation11_spill] sm:$0xff] }
 0x11b   :  { %v581_v57 = vsub.f32 %v1400_v59, %v494_v16  ;;  %1059 = vpow2.f32 %v606_v42  ;;  %v614_v5 = vmul.f32 1.442695, %v577_v38  ;;  %v1516_v7 = vmax.f32 %v555_v29, %v556_v24  ;;  %v1900_v19 = vld [vmem:[#allocation18_spill] sm:$0xff]  ;;  %v1902_v38 = vld [vmem:[#allocation19_spill] sm:$0xff]  ;;  %v1904_v42 = vld [vmem:[#allocation20_spill] sm:$0xff] }
 0x11c   :  { %v582_v54 = vsub.f32 %v1389_v55, %v501_v3  ;;  %1061 = vpow2.f32 %v608_v36  ;;  %v616_v58 = vmul.f32 1.442695, %v578_v45  ;;  %v1519_v34 = vmax.f32 %v562_v25, %v563_v32  ;;  %v1896_v25 = vld [vmem:[#allocation16_spill] sm:$0xff] }
 0x11d   :  { %v583_v46 = vsub.f32 %v1403_v60, %v501_v3  ;;  %1063 = vpow2.f32 %v610_v4  ;;  %v618_v53 = vmul.f32 1.442695, %v579_v49  ;;  %v1522_v50 = vmax.f32 %v569_v28, %v570_v37 }
 0x11e   :  { %v584_v1 = vsub.f32 %v1391_v56, %v1492_v30  ;;  %1065 = vpow2.f32 %v612_v27  ;;  %v620_v59 = vmul.f32 1.442695, %v580_v52  ;;  %v585_v51 = vsub.f32 %v1410_v63, %v1492_v30  ;;  %v1890_v56 = vld [vmem:[#allocation13_spill] sm:$0xff] }
 0x11f   :  { %v586_v55 = vsub.f32 %v1407_v62, %v1495_v15  ;;  %1067 = vpow2.f32 %v614_v5  ;;  %v622_v13 = vmul.f32 1.442695, %v581_v57  ;;  %v587_v60 = vsub.f32 %v1888_v33, %v1495_v15  ;;  %v1892_v62 = vld [vmem:[#allocation14_spill] sm:$0xff]  ;;  %v1897_v30 = vld [vmem:[#allocation9_spill] sm:$0xff] }
 0x120   :  { %v588_v61 = vsub.f32 %v1889_v8, %v1500_v20  ;;  %1069 = vpow2.f32 %v616_v58  ;;  %v624_v10 = vmul.f32 1.442695, %v582_v54  ;;  %v589_v11 = vsub.f32 %v1890_v56, %v1500_v20  ;;  %v245_v20 = vpop.f32.mrf.mxu1 }
 0x121   :  { %v590_v12 = vsub.f32 %v1891_v41, %v1504_v44  ;;  %1071 = vpow2.f32 %v618_v53  ;;  %v626_v63 = vmul.f32 1.442695, %v583_v46  ;;  %v591_v40 = vsub.f32 %v1892_v62, %v1504_v44 }
 0x122   :  { %v592_v14 = vsub.f32 %v1893_v2, %v1506_v39  ;;  %1073 = vpow2.f32 %v620_v59  ;;  %v628_v16 = vmul.f32 1.442695, %v584_v1  ;;  %v593_v6 = vsub.f32 %v1894_v17, %v1506_v39  ;;  %v1903_v39 = vld [vmem:[#allocation12_spill] sm:$0xff]  ;;  %v1906_v17 = vld [vmem:[#allocation3_spill] sm:$0xff] }
 0x123   :  { %v594_v3 = vsub.f32 %v1895_v43, %v1510_v9  ;;  %1075 = vpow2.f32 %v622_v13  ;;  %v630_v29 = vmul.f32 1.442695, %v585_v51  ;;  %v595_v28 = vsub.f32 %v1896_v25, %v1510_v9  ;;  %v1905_v9 = vld [vmem:[#allocation2_spill] sm:$0xff] }
 0x124   :  { %v596_v31 = vsub.f32 %v1897_v30, %v1513_v47  ;;  %1077 = vpow2.f32 %v624_v10  ;;  %v632_v35 = vmul.f32 1.442695, %v586_v55  ;;  %v597_v15 = vsub.f32 %v1898_v26, %v1513_v47 }
 0x125   :  { %v598_v18 = vsub.f32 %v1899_v0, %v1516_v7  ;;  %1079 = vpow2.f32 %v626_v63  ;;  %v634_v21 = vmul.f32 1.442695, %v587_v60  ;;  %v599_v22 = vsub.f32 %v1900_v19, %v1516_v7 }
 0x126   :  { %v600_v24 = vsub.f32 %v1901_v23, %v1519_v34  ;;  %1081 = vpow2.f32 %v628_v16  ;;  %v636_v32 = vmul.f32 1.442695, %v588_v61  ;;  %v601_v44 = vsub.f32 %v1902_v38, %v1519_v34 }
 0x127   :  { %v1058_v37 = vpop.eup %1057  ;;  %v602_v45 = vsub.f32 %v1903_v39, %v1522_v50  ;;  %1083 = vpow2.f32 %v630_v29  ;;  %v638_v48 = vmul.f32 1.442695, %v589_v11  ;;  %v603_v36 = vsub.f32 %v1904_v42, %v1522_v50 }
 0x128   :  { %v1060_v49 = vpop.eup %1059  ;;  %1085 = vpow2.f32 %v632_v35  ;;  %v640_v4 = vmul.f32 1.442695, %v590_v12  ;;  %v1565_v52 = vadd.f32 %v245_v20, %v1905_v9  ;;  %v642_v47 = vmul.f32 1.442695, %v591_v40 }
 0x129   :  { %v1062_v27 = vpop.eup %1061  ;;  %1087 = vpow2.f32 %v634_v21  ;;  %v644_v57 = vmul.f32 1.442695, %v592_v14  ;;  %v668_v5 = vadd.f32 %v1060_v49, %v1058_v37  ;;  %v646_v54 = vmul.f32 1.442695, %v593_v6 }
 0x12a   :  { %v1064_v7 = vpop.eup %1063  ;;  %1089 = vpow2.f32 %v636_v32  ;;  %v648_v58 = vmul.f32 1.442695, %v594_v3  ;;  %v650_v34 = vmul.f32 1.442695, %v595_v28  ;;  %v652_v53 = vmul.f32 1.442695, %v596_v31 }
 0x12b   :  { %v1066_v46 = vpop.eup %1065  ;;  %1091 = vpow2.f32 %v638_v48  ;;  %v669_v1 = vrot.slane %v668_v5, 4  ;;  %v675_v50 = vadd.f32 %v1064_v7, %v1062_v27  ;;  %v654_v51 = vmul.f32 1.442695, %v597_v15 }
 0x12c   :  { %v1567_v59 = vpop.eup %1067  ;;  %1093 = vpow2.f32 %v640_v4  ;;  %v656_v55 = vmul.f32 1.442695, %v598_v18  ;;  %v658_v13 = vmul.f32 1.442695, %v599_v22  ;;  %v660_v56 = vmul.f32 1.442695, %v600_v24 }
 0x12d   :  { %v1569_v33 = vpop.eup %1069  ;;  %1095 = vpow2.f32 %v642_v47  ;;  %v670_v60 = vadd.f32 %v669_v1, %v668_v5  ;;  %v676_v8 = vrot.slane %v675_v50, 4  ;;  %v682_v61 = vadd.f32 %v1567_v59, %v1066_v46 }
 0x12e   :  { %v1572_v10 = vpop.eup %1071  ;;  %1097 = vpow2.f32 %v644_v57  ;;  %v662_v11 = vmul.f32 1.442695, %v601_v44  ;;  %v664_v41 = vmul.f32 1.442695, %v602_v45  ;;  %v666_v14 = vmul.f32 1.442695, %v603_v36 }
 0x12f   :  { %v1574_v12 = vpop.eup %1073  ;;  %1099 = vpow2.f32 %v646_v54  ;;  %v671_v63 = vrot.slane %v670_v60, 2  ;;  %v677_v62 = vadd.f32 %v676_v8, %v675_v50  ;;  %v683_v40 = vrot.slane %v682_v61, 4 }
 0x130   :  { %v1576_v2 = vpop.eup %1075  ;;  %1101 = vpow2.f32 %v648_v58  ;;  %v689_v16 = vadd.f32 %v1572_v10, %v1569_v33  ;;  %v780_v6 = vmul.f32 %v1058_v37, %v1906_v17  ;;  %v781_v25 = vmul.f32 %v1060_v49, %v1565_v52 }
 0x131   :  { %v1581_v43 = vpop.eup %1077  ;;  %1103 = vpow2.f32 %v650_v34  ;;  %v678_v3 = vrot.slane %v677_v62, 2  ;;  %v684_v29 = vadd.f32 %v683_v40, %v682_v61  ;;  %v696_v31 = vadd.f32 %v1576_v2, %v1574_v12 }
 0x132   :  { %v1584_v28 = vpop.eup %1079  ;;  %1105 = vpow2.f32 %v652_v53  ;;  %v690_v30 = vrot.slane %v689_v16, 4  ;;  %v1589_v35 = vmul.f32 %v1062_v27, %v1906_v17  ;;  %v672_v15 = vadd.f32 %v671_v63, %v670_v60 }
 0x133   :  { %v1591_v26 = vpop.eup %1081  ;;  %1107 = vpow2.f32 %v654_v51  ;;  %v685_v0 = vrot.slane %v684_v29, 2  ;;  %v1594_v18 = vmul.f32 %v1064_v7, %v1565_v52  ;;  %v697_v19 = vrot.slane %v696_v31, 4 }
 0x134   :  { %v1596_v21 = vpop.eup %1083  ;;  %1109 = vpow2.f32 %v656_v55  ;;  %v691_v20 = vadd.f32 %v690_v30, %v689_v16  ;;  %v703_v22 = vadd.f32 %v1584_v28, %v1581_v43  ;;  %v679_v24 = vadd.f32 %v678_v3, %v677_v62 }
 0x135   :  { %v1600_v23 = vpop.eup %1085  ;;  %1111 = vpow2.f32 %v658_v13  ;;  %v1603_v32 = vmul.f32 %v1066_v46, %v1906_v17  ;;  %v1605_v37 = vadd.f32 %v781_v25, %v780_v6  ;;  %v698_v39 = vadd.f32 %v697_v19, %v696_v31 }
 0x136   :  { %v1607_v38 = vpop.eup %1087  ;;  %1113 = vpow2.f32 %v660_v56  ;;  %v692_v44 = vrot.slane %v691_v20, 2  ;;  %v704_v45 = vrot.slane %v703_v22, 4  ;;  %v673_v49 = vrot.slane %v672_v15, 1 }
 0x137   :  { %v1609_v48 = vpop.eup %1089  ;;  %1115 = vpow2.f32 %v662_v11  ;;  %v686_v42 = vadd.f32 %v685_v0, %v684_v29  ;;  %v710_v36 = vadd.f32 %v1596_v21, %v1591_v26  ;;  %v699_v27 = vrot.slane %v698_v39, 2 }
 0x138   :  { %v1613_v4 = vpop.eup %1091  ;;  %1117 = vpow2.f32 %v664_v41  ;;  %v693_v9 = vadd.f32 %v692_v44, %v691_v20  ;;  %v705_v47 = vadd.f32 %v704_v45, %v703_v22  ;;  %v717_v7 = vadd.f32 %v1607_v38, %v1600_v23 }
 0x139   :  { %v1615_v57 = vpop.eup %1093  ;;  %1119 = vpow2.f32 %v666_v14  ;;  %v711_v5 = vrot.slane %v710_v36, 4  ;;  %v1621_v54 = vmul.f32 %v1567_v59, %v1565_v52  ;;  %v680_v34 = vrot.slane %v679_v24, 1 }
 0x13a   :  { %v1623_v58 = vpop.eup %1095  ;;  %v700_v46 = vadd.f32 %v699_v27, %v698_v39  ;;  %v706_v53 = vrot.slane %v705_v47, 2  ;;  %v724_v1 = vadd.f32 %v1613_v4, %v1609_v48  ;;  %v674_v51 = vadd.f32 %v673_v49, %v672_v15 }
 0x13b   :  { %v1627_v50 = vpop.eup %1097  ;;  %v712_v55 = vadd.f32 %v711_v5, %v710_v36  ;;  %v718_v13 = vrot.slane %v717_v7, 4  ;;  %v731_v60 = vadd.f32 %v1623_v58, %v1615_v57  ;;  %v687_v59 = vrot.slane %v686_v42, 1 }
 0x13c   :  { %v1631_v8 = vpop.eup %1099  ;;  %v694_v61 = vrot.slane %v693_v9, 1  ;;  %v707_v56 = vadd.f32 %v706_v53, %v705_v47  ;;  %v725_v11 = vrot.slane %v724_v1, 4  ;;  %v681_v6 = vadd.f32 %v680_v34, %v679_v24 }
 0x13d   :  { %v1633_v41 = vpop.eup %1101  ;;  %v713_v63 = vrot.slane %v712_v55, 2  ;;  %v719_v62 = vadd.f32 %v718_v13, %v717_v7  ;;  %v732_v40 = vrot.slane %v731_v60, 4  ;;  %v738_v14 = vadd.f32 %v1631_v8, %v1627_v50 }
 0x13e   :  { %v1637_v16 = vpop.eup %1103  ;;  %v701_v3 = vrot.slane %v700_v46, 1  ;;  %v726_v29 = vadd.f32 %v725_v11, %v724_v1  ;;  %v1641_v25 = vmul.f32 %v1569_v33, %v1906_v17  ;;  %v708_v31 = vrot.slane %v707_v56, 1 }
 0x13f   :  { %v1643_v30 = vpop.eup %1105  ;;  %v720_v15 = vrot.slane %v719_v62, 2  ;;  %v733_v0 = vadd.f32 %v732_v40, %v731_v60  ;;  %v739_v20 = vrot.slane %v738_v14, 4  ;;  %v688_v22 = vadd.f32 %v687_v59, %v686_v42 }
 0x140   :  { %v1645_v19 = vpop.eup %1107  ;;  %v727_v44 = vrot.slane %v726_v29, 2  ;;  %v745_v39 = vadd.f32 %v1637_v16, %v1633_v41  ;;  %1121 = vrcp.f32 %v674_v51  ;;  %v695_v45 = vadd.f32 %v694_v61, %v693_v9 }
 0x141   :  { %1907 = vst [vmem:[#allocation4_spill] sm:$0xff] %v1645_v19  ;;  %v1649_v24 = vpop.eup %1109  ;;  %v714_v49 = vadd.f32 %v713_v63, %v712_v55  ;;  %v734_v33 = vrot.slane %v733_v0, 2  ;;  %v740_v36 = vadd.f32 %v739_v20, %v738_v14  ;;  %v702_v47 = vadd.f32 %v701_v3, %v700_v46 }
 0x142   :  { %1908 = vst [vmem:[#allocation5_spill] sm:$0xff] %v1649_v24  ;;  %v1651_v27 = vpop.eup %1111  ;;  %v721_v5 = vadd.f32 %v720_v15, %v719_v62  ;;  %v746_v7 = vrot.slane %v745_v39, 4  ;;  %v752_v34 = vadd.f32 %v1645_v19, %v1643_v30  ;;  %v709_v53 = vadd.f32 %v708_v31, %v707_v56 }
 0x143   :  { %1909 = vst [vmem:[#allocation13_spill] sm:$0xff] %v1651_v27  ;;  %v1655_v42 = vpop.eup %1113  ;;  %v728_v1 = vadd.f32 %v727_v44, %v726_v29  ;;  %v741_v13 = vrot.slane %v740_v36, 2  ;;  %1123 = vrcp.f32 %v681_v6  ;;  %v735_v9 = vadd.f32 %v734_v33, %v733_v0 }
 0x144   :  { %1910 = vst [vmem:[#allocation6_spill] sm:$0xff] %v1655_v42  ;;  %v1657_v51 = vpop.eup %1115  ;;  %v747_v55 = vadd.f32 %v746_v7, %v745_v39  ;;  %v753_v60 = vrot.slane %v752_v34, 4  ;;  %v759_v59 = vadd.f32 %v1651_v27, %v1649_v24  ;;  %v715_v61 = vrot.slane %v714_v49, 1 }
 0x145   :  { %1911 = vst [vmem:[#allocation14_spill] sm:$0xff] %v1657_v51  ;;  %v1661_v46 = vpop.eup %1117  ;;  %v742_v11 = vadd.f32 %v741_v13, %v740_v36  ;;  %v766_v63 = vadd.f32 %v1657_v51, %v1655_v42  ;;  %1125 = vrcp.f32 %v688_v22  ;;  %v722_v62 = vrot.slane %v721_v5, 1 }
 0x146   :  { %v1665_v56 = vpop.eup %1119  ;;  %v748_v40 = vrot.slane %v747_v55, 2  ;;  %v754_v14 = vadd.f32 %v753_v60, %v752_v34  ;;  %v760_v6 = vrot.slane %v759_v59, 4  ;;  %v729_v3 = vrot.slane %v728_v1, 1 }
 0x147   :  { %1912 = vst [vmem:[#allocation7_spill] sm:$0xff] %v1665_v56  ;;  %v767_v29 = vrot.slane %v766_v63, 4  ;;  %v773_v31 = vadd.f32 %v1665_v56, %v1661_v46  ;;  %1127 = vrcp.f32 %v695_v45  ;;  %v736_v15 = vrot.slane %v735_v9, 1 }
 0x148   :  { %v749_v0 = vadd.f32 %v748_v40, %v747_v55  ;;  %v755_v20 = vrot.slane %v754_v14, 2  ;;  %v761_v44 = vadd.f32 %v760_v6, %v759_v59  ;;  %v716_v39 = vadd.f32 %v715_v61, %v714_v49 }
 0x149   :  { %v743_v33 = vrot.slane %v742_v11, 1  ;;  %v768_v36 = vadd.f32 %v767_v29, %v766_v63  ;;  %v774_v22 = vrot.slane %v773_v31, 4  ;;  %v723_v7 = vadd.f32 %v722_v62, %v721_v5 }
 0x14a   :  { %v750_v13 = vrot.slane %v749_v0, 1  ;;  %v756_v51 = vadd.f32 %v755_v20, %v754_v14  ;;  %v762_v42 = vrot.slane %v761_v44, 2  ;;  %v730_v34 = vadd.f32 %v729_v3, %v728_v1 }
 0x14b   :  { %v769_v60 = vrot.slane %v768_v36, 2  ;;  %v775_v27 = vadd.f32 %v774_v22, %v773_v31  ;;  %1129 = vrcp.f32 %v702_v47  ;;  %v737_v24 = vadd.f32 %v736_v15, %v735_v9 }
 0x14c   :  { %v757_v19 = vrot.slane %v756_v51, 1  ;;  %v763_v56 = vadd.f32 %v762_v42, %v761_v44  ;;  %1131 = vrcp.f32 %v709_v53  ;;  %v744_v55 = vadd.f32 %v743_v33, %v742_v11 }
 0x14d   :  { %v1669_v45 = vpop.eup %1121  ;;  %v770_v59 = vadd.f32 %v769_v60, %v768_v36  ;;  %v776_v49 = vrot.slane %v775_v27, 2  ;;  %1133 = vrcp.f32 %v716_v39  ;;  %v751_v61 = vadd.f32 %v750_v13, %v749_v0 }
 0x14e   :  { %v764_v63 = vrot.slane %v763_v56, 1  ;;  %1135 = vrcp.f32 %v723_v7  ;;  %v813_v5 = vrot.slane %v1605_v37, 4  ;;  %v758_v62 = vadd.f32 %v757_v19, %v756_v51 }
 0x14f   :  { %v771_v1 = vrot.slane %v770_v59, 1  ;;  %v777_v40 = vadd.f32 %v776_v49, %v775_v27  ;;  %1137 = vrcp.f32 %v730_v34  ;;  %v787_v42 = vmul.f32 %v1572_v10, %v1565_v52 }
 0x150   :  { %v1672_v47 = vpop.eup %1123  ;;  %v765_v9 = vadd.f32 %v764_v63, %v763_v56  ;;  %1139 = vrcp.f32 %v737_v24  ;;  %v788_v53 = vmul.f32 %v1574_v12, %v1906_v17  ;;  %v789_v6 = vmul.f32 %v1576_v2, %v1565_v52 }
 0x151   :  { %v772_v11 = vadd.f32 %v771_v1, %v770_v59  ;;  %v778_v14 = vrot.slane %v777_v40, 1  ;;  %1141 = vrcp.f32 %v744_v55  ;;  %v790_v27 = vmul.f32 %v1581_v43, %v1906_v17 }
 0x152   :  { %v1680_v19 = vpop.eup %1125  ;;  %1143 = vrcp.f32 %v751_v61  ;;  %v791_v24 = vmul.f32 %v1584_v28, %v1565_v52  ;;  %v792_v10 = vmul.f32 %v1591_v26, %v1906_v17  ;;  %v793_v12 = vmul.f32 %v1596_v21, %v1565_v52 }
 0x153   :  { %1145 = vrcp.f32 %v758_v62  ;;  %v794_v51 = vmul.f32 %v1600_v23, %v1906_v17  ;;  %v795_v2 = vmul.f32 %v1607_v38, %v1565_v52  ;;  %v796_v43 = vmul.f32 %v1609_v48, %v1906_v17 }
 0x154   :  { %v1694_v56 = vpop.eup %1127  ;;  %1147 = vrcp.f32 %v765_v9  ;;  %v797_v28 = vmul.f32 %v1613_v4, %v1565_v52  ;;  %v1702_v26 = vmul.f32 %v1615_v57, %v1906_v17  ;;  %v779_v21 = vadd.f32 %v778_v14, %v777_v40  ;;  %v1914_v14 = vld [vmem:[#allocation5_spill] sm:$0xff] }
 0x155   :  { %1149 = vrcp.f32 %v772_v11  ;;  %v1706_v23 = vmul.f32 %v1623_v58, %v1565_v52  ;;  %v1710_v38 = vmul.f32 %v1627_v50, %v1906_v17  ;;  %v1714_v48 = vmul.f32 %v1631_v8, %v1565_v52 }
 0x156   :  { %v1718_v4 = vmul.f32 %v1633_v41, %v1906_v17  ;;  %v814_v57 = vadd.f32 %v813_v5, %v1605_v37  ;;  %v819_v3 = vadd.f32 %v1594_v18, %v1589_v35  ;;  %v826_v58 = vadd.f32 %v1621_v54, %v1603_v32 }
 0x157   :  { %v833_v29 = vadd.f32 %v787_v42, %v1641_v25  ;;  %v840_v50 = vadd.f32 %v789_v6, %v788_v53  ;;  %v847_v31 = vadd.f32 %v791_v24, %v790_v27  ;;  %v854_v20 = vadd.f32 %v793_v12, %v792_v10  ;;  %v1913_v53 = vld [vmem:[#allocation4_spill] sm:$0xff] }
 0x158   :  { %v1726_v15 = vpop.eup %1129  ;;  %v815_v8 = vrot.slane %v814_v57, 2  ;;  %v820_v0 = vrot.slane %v819_v3, 4  ;;  %v861_v44 = vadd.f32 %v795_v2, %v794_v51  ;;  %v827_v39 = vrot.slane %v826_v58, 4 }
 0x159   :  { %v1728_v41 = vpop.eup %1131  ;;  %v834_v37 = vrot.slane %v833_v29, 4  ;;  %v841_v33 = vrot.slane %v840_v50, 4  ;;  %v848_v36 = vrot.slane %v847_v31, 4  ;;  %v855_v54 = vrot.slane %v854_v20, 4 }
 0x15a   :  { %v1730_v35 = vpop.eup %1133  ;;  %v816_v18 = vadd.f32 %v815_v8, %v814_v57  ;;  %v821_v32 = vadd.f32 %v820_v0, %v819_v3  ;;  %v862_v25 = vrot.slane %v861_v44, 4  ;;  %v828_v7 = vadd.f32 %v827_v39, %v826_v58  ;;  %v1916_v8 = vld [vmem:[#allocation6_spill] sm:$0xff] }
 0x15b   :  { %v1732_v22 = vpop.eup %1135  ;;  %v835_v13 = vadd.f32 %v834_v37, %v833_v29  ;;  %v842_v34 = vadd.f32 %v841_v33, %v840_v50  ;;  %v849_v60 = vadd.f32 %v848_v36, %v847_v31  ;;  %v803_v59 = vmul.f32 %v1637_v16, %v1565_v52  ;;  %v1915_v50 = vld [vmem:[#allocation13_spill] sm:$0xff]  ;;  %v1918_v37 = vld [vmem:[#allocation7_spill] sm:$0xff] }
 0x15c   :  { %v1734_v55 = vpop.eup %1137  ;;  %v822_v49 = vrot.slane %v821_v32, 2  ;;  %v856_v61 = vadd.f32 %v855_v54, %v854_v20  ;;  %v863_v63 = vadd.f32 %v862_v25, %v861_v44  ;;  %v804_v62 = vmul.f32 %v1643_v30, %v1906_v17  ;;  %v1917_v20 = vld [vmem:[#allocation14_spill] sm:$0xff] }
 0x15d   :  { %v1738_v5 = vpop.eup %1139  ;;  %v829_v1 = vrot.slane %v828_v7, 2  ;;  %v836_v40 = vrot.slane %v835_v13, 2  ;;  %v843_v9 = vrot.slane %v842_v34, 2  ;;  %v805_v11 = vmul.f32 %v1913_v53, %v1565_v52 }
 0x15e   :  { %v1742_v42 = vpop.eup %1141  ;;  %v806_v6 = vmul.f32 %v1914_v14, %v1906_v17  ;;  %v817_v16 = vrot.slane %v816_v18, 1  ;;  %v850_v27 = vrot.slane %v849_v60, 2  ;;  %v1750_v10 = vadd.f32 %v822_v49, %v821_v32 }
 0x15f   :  { %v1748_v24 = vpop.eup %1143  ;;  %v1752_v12 = vadd.f32 %v829_v1, %v828_v7  ;;  %v857_v30 = vrot.slane %v856_v61, 2  ;;  %v864_v51 = vrot.slane %v863_v63, 2  ;;  %1151 = vrcp.f32 %v779_v21 }
 0x160   :  { %v1754_v2 = vpop.eup %1145  ;;  %v1756_v57 = vadd.f32 %v836_v40, %v835_v13  ;;  %v1758_v3 = vadd.f32 %v843_v9, %v842_v34  ;;  %v868_v58 = vadd.f32 %v797_v28, %v796_v43  ;;  %v807_v31 = vmul.f32 %v1915_v50, %v1565_v52 }
 0x161   :  { %v1760_v29 = vpop.eup %1147  ;;  %v808_v0 = vmul.f32 %v1916_v8, %v1906_v17  ;;  %v809_v44 = vmul.f32 %v1917_v20, %v1565_v52  ;;  %v810_v39 = vmul.f32 %v1661_v46, %v1906_v17  ;;  %v811_v33 = vmul.f32 %v1918_v37, %v1565_v52 }
 0x162   :  { %v1770_v21 = vpop.eup %1149  ;;  %v1774_v43 = vadd.f32 %v817_v16, %v816_v18  ;;  %v1776_v28 = vadd.f32 %v850_v27, %v849_v60  ;;  %v869_v36 = vrot.slane %v868_v58, 4  ;;  %v824_v32 = vrot.slane %v1750_v10, 1 }
 0x163   :  { %v831_v54 = vrot.slane %v1752_v12, 1  ;;  %v1780_v25 = vadd.f32 %v857_v30, %v856_v61  ;;  %v1782_v7 = vadd.f32 %v864_v51, %v863_v63  ;;  %v838_v17 = vrot.slane %v1756_v57, 1 }
 0x164   :  { %v845_v46 = vrot.slane %v1758_v3, 1  ;;  %v870_v13 = vadd.f32 %v869_v36, %v868_v58  ;;  %v875_v52 = vadd.f32 %v1706_v23, %v1702_v26  ;;  %v882_v18 = vadd.f32 %v1714_v48, %v1710_v38 }
 0x165   :  { %v889_v34 = vadd.f32 %v803_v59, %v1718_v4  ;;  %v896_v60 = vadd.f32 %v805_v11, %v804_v62  ;;  %v903_v49 = vadd.f32 %v807_v31, %v806_v6  ;;  %v910_v40 = vadd.f32 %v809_v44, %v808_v0 }
 0x166   :  { %v871_v1 = vrot.slane %v870_v13, 2  ;;  %v876_v61 = vrot.slane %v875_v52, 4  ;;  %v917_v63 = vadd.f32 %v811_v33, %v810_v39  ;;  %v883_v9 = vrot.slane %v882_v18, 4 }
 0x167   :  { %v890_v53 = vrot.slane %v889_v34, 4  ;;  %v897_v14 = vrot.slane %v896_v60, 4  ;;  %v904_v16 = vrot.slane %v903_v49, 4  ;;  %v911_v51 = vrot.slane %v910_v40, 4 }
 0x168   :  { %v872_v27 = vadd.f32 %v871_v1, %v870_v13  ;;  %v877_v30 = vadd.f32 %v876_v61, %v875_v52  ;;  %v918_v58 = vrot.slane %v917_v63, 4  ;;  %v884_v26 = vadd.f32 %v883_v9, %v882_v18 }
 0x169   :  { %v891_v23 = vadd.f32 %v890_v53, %v889_v34  ;;  %v898_v50 = vadd.f32 %v897_v14, %v896_v60  ;;  %v905_v38 = vadd.f32 %v904_v16, %v903_v49  ;;  %v852_v48 = vrot.slane %v1776_v28, 1 }
 0x16a   :  { %v878_v4 = vrot.slane %v877_v30, 2  ;;  %v912_v59 = vadd.f32 %v911_v51, %v910_v40  ;;  %v919_v62 = vadd.f32 %v918_v58, %v917_v63  ;;  %v885_v11 = vrot.slane %v884_v26, 2 }
 0x16b   :  { %v892_v6 = vrot.slane %v891_v23, 2  ;;  %v899_v31 = vrot.slane %v898_v50, 2  ;;  %v906_v8 = vrot.slane %v905_v38, 2  ;;  %v873_v0 = vrot.slane %v872_v27, 1 }
 0x16c   :  { %v879_v20 = vadd.f32 %v878_v4, %v877_v30  ;;  %v913_v44 = vrot.slane %v912_v59, 2  ;;  %v920_v39 = vrot.slane %v919_v62, 2  ;;  %v1152_v37 = vpop.eup %1151  ;;  %v886_v33 = vadd.f32 %v885_v11, %v884_v26 }
 0x16d   :  { %v893_v36 = vadd.f32 %v892_v6, %v891_v23  ;;  %v900_v13 = vadd.f32 %v899_v31, %v898_v50  ;;  %v907_v52 = vadd.f32 %v906_v8, %v905_v38  ;;  %v825_v18 = vadd.f32 %v824_v32, %v1750_v10 }
 0x16e   :  { %v880_v34 = vrot.slane %v879_v20, 1  ;;  %v914_v60 = vadd.f32 %v913_v44, %v912_v59  ;;  %v921_v49 = vadd.f32 %v920_v39, %v919_v62  ;;  %v859_v1 = vrot.slane %v1780_v25, 1 }
 0x16f   :  { %v866_v61 = vrot.slane %v1782_v7, 1  ;;  %v887_v40 = vrot.slane %v886_v33, 1  ;;  %v894_v63 = vrot.slane %v893_v36, 1  ;;  %v832_v9 = vadd.f32 %v831_v54, %v1752_v12 }
 0x170   :  { %v839_v53 = vadd.f32 %v838_v17, %v1756_v57  ;;  %v846_v14 = vadd.f32 %v845_v46, %v1758_v3  ;;  %v874_v16 = vadd.f32 %v873_v0, %v872_v27  ;;  %v881_v10 = vadd.f32 %v880_v34, %v879_v20 }
 0x171   :  { %v901_v32 = vrot.slane %v900_v13, 1  ;;  %v908_v30 = vrot.slane %v907_v52, 1  ;;  %v915_v51 = vrot.slane %v914_v60, 1  ;;  %v888_v58 = vadd.f32 %v887_v40, %v886_v33 }
 0x172   :  { %v895_v26 = vadd.f32 %v894_v63, %v893_v36  ;;  %v922_v23 = vrot.slane %v921_v49, 1  ;;  %v941_v50 = vmul.f32 %v1672_v47, %v825_v18  ;;  %v853_v38 = vadd.f32 %v852_v48, %v1776_v28 }
 0x173   :  { %v940_v12 = vmul.f32 %v1669_v45, %v1774_v43  ;;  %v942_v57 = vmul.f32 %v1680_v19, %v832_v9  ;;  %v943_v3 = vmul.f32 %v1694_v56, %v839_v53  ;;  %v948_v54 = vmul.f32 %v1734_v55, %v874_v16 }
 0x174   :  { %v949_v17 = vmul.f32 %v1738_v5, %v881_v10  ;;  %v950_v46 = vmul.f32 %v1742_v42, %v888_v58  ;;  %v951_v27 = vmul.f32 %v1748_v24, %v895_v26  ;;  %v860_v4 = vadd.f32 %v859_v1, %v1780_v25 }
 0x175   :  { %v867_v47 = vadd.f32 %v866_v61, %v1782_v7  ;;  %v902_v28 = vadd.f32 %v901_v32, %v900_v13  ;;  %v909_v48 = vadd.f32 %v908_v30, %v907_v52  ;;  %v916_v59 = vadd.f32 %v915_v51, %v914_v60 }
 0x176   :  { %v923_v45 = vadd.f32 %v922_v23, %v921_v49  ;;  %v973_v19 = vsel %vm972_vm0, %v941_v50, %v940_v12  ;;  %v986_v56 = vsel %vm972_vm0, %v949_v17, %v948_v54  ;;  %v944_v55 = vmul.f32 %v1726_v15, %v846_v14 }
 0x177   :  { %v952_v5 = vmul.f32 %v1754_v2, %v902_v28  ;;  %v975_v42 = vsel %vm974_vm1, %v942_v57, %v973_v19  ;;  %v987_v24 = vsel %vm974_vm1, %v950_v46, %v986_v56  ;;  %v945_v43 = vmul.f32 %v1728_v41, %v853_v38 }
 0x178   :  { %v953_v25 = vmul.f32 %v1760_v29, %v909_v48  ;;  %v977_v7 = vsel %vm976_vm2, %v943_v3, %v975_v42  ;;  %v988_v62 = vsel %vm976_vm2, %v951_v27, %v987_v24  ;;  %v946_v11 = vmul.f32 %v1730_v35, %v860_v4 }
 0x179   :  { %v954_v6 = vmul.f32 %v1770_v21, %v916_v59  ;;  %v979_v15 = vsel %vm978_vm3, %v944_v55, %v977_v7  ;;  %v989_v2 = vsel %vm978_vm3, %v952_v5, %v988_v62  ;;  %v947_v31 = vmul.f32 %v1732_v22, %v867_v47 }
 0x17a   :  { %v955_v8 = vmul.f32 %v1152_v37, %v923_v45  ;;  %v981_v0 = vsel %vm980_vm4, %v945_v43, %v979_v15  ;;  %v990_v41 = vsel %vm980_vm4, %v953_v25, %v989_v2 }
 0x17b   :  { %v983_v29 = vsel %vm982_vm5, %v946_v11, %v981_v0  ;;  %v991_v20 = vsel %vm982_vm5, %v954_v6, %v990_v41 }
 0x17c   :  { %v985_v44 = vsel %vm984_vm6, %v947_v31, %v983_v29  ;;  %v992_v35 = vsel %vm984_vm6, %v955_v8, %v991_v20 }
 0x17d   :  { %995 = vst [vmem:[%s1843_s6] sm:$0xff] %v985_v44  ;;  %996 = vst [vmem:[%s1843_s6 + $0x8] sm:$0xff] %v992_v35 }

</bundles_post_ra>
